<compile_context>
chip_gen: v6e
topology: v6e:2x2x1
jax: 0.10.0
libtpu: 0.0.40
codegen_flags: <defaults>
</compile_context>

<pallas_src>
import functools
import numpy as np
import jax
import jax.numpy as jnp
from jax.experimental import pallas as pl
from jax.experimental.pallas import tpu as pltpu

SQRT2 = float(np.sqrt(2.0))
LRELU_SLOPE = 0.2


def _lrelu(x, gain):
    # matches torch F.leaky_relu(x, 0.2) followed by * gain
    return jnp.where(x >= 0.0, x, LRELU_SLOPE * x) * gain


# ----------------------------- fused Pallas kernel -----------------------------

def foreword_kernel(x_ref, ws0_ref, ws1_ref, skip_ref,
                    fc_wT_ref, fc_b_ref,
                    a1_wsT_ref, a1_xT_ref, a1_b_ref,
                    a2_wsT_ref, a2_xT_ref, a2_b_ref,
                    convM_ref, w2sumT_ref, expand_ref,
                    rgbM_ref, rgb_b_ref,
                    xout_ref, img_ref):
    f32 = jnp.float32
    x = x_ref[...]                                     # (N, Z) latent (x_global)

    # ---- fc (activation='lrelu'): lrelu(x @ (w*g).T + b) * sqrt(2), fused skip add
    h = jnp.dot(x, fc_wT_ref[...], preferred_element_type=f32) + fc_b_ref[...]
    h = _lrelu(h, SQRT2) + skip_ref[...]               # (N, C*16) == x.view(N,C,4,4) + feats[4]

    # ---- style affines (mod vector = [ws_slot, x_global]; the concat is folded
    #      into two dots; gains were folded into the weights at prep time)
    s1 = (jnp.dot(ws0_ref[...], a1_wsT_ref[...], preferred_element_type=f32)
          + jnp.dot(x, a1_xT_ref[...], preferred_element_type=f32)
          + a1_b_ref[...])                             # (N, C)  conv styles
    s2 = (jnp.dot(ws1_ref[...], a2_wsT_ref[...], preferred_element_type=f32)
          + jnp.dot(x, a2_xT_ref[...], preferred_element_type=f32)
          + a2_b_ref[...])                             # (N, C)  torgb styles (rgb gain folded)

    E = expand_ref[...]                                # (C, C*16): per-channel -> per-pixel broadcast

    # ---- modulated + demodulated 3x3 conv (scale-activations formulation)
    xs = h * jnp.dot(s1, E, preferred_element_type=f32)            # modulate input per (n, c)
    y = jnp.dot(xs, convM_ref[...], preferred_element_type=f32)    # shared-weight conv matmul -> (N, O*16)
    d = jax.lax.rsqrt(jnp.dot(s1 * s1, w2sumT_ref[...],
                              preferred_element_type=f32) + 1e-8)  # (N, O) demod coefficients
    y = y * jnp.dot(d, E, preferred_element_type=f32)              # demodulate per (n, o)
    # TODO(synk): random noise term omitted — noise_strength initializes to 0 so it is
    # exactly zero here; a nonzero strength would need pltpu.prng_random_bits.
    x_out = _lrelu(y, SQRT2)                           # SynthesisLayer lrelu * act_gain
    xout_ref[...] = x_out

    # ---- ToRGB: 1x1 modulated conv (no demod) + bias, linear activation
    xs2 = x_out * jnp.dot(s2, E, preferred_element_type=f32)
    img_ref[...] = jnp.dot(xs2, rgbM_ref[...], preferred_element_type=f32) + rgb_b_ref[...]


# ----------------------------- parameter preparation -----------------------------

def _conv3x3_tap_tensor():
    # T[i, j, p_in, q_out] = 1 iff input pixel p_in feeds output pixel q_out through
    # 3x3 tap (i, j) with padding=1 on a 4x4 plane (cross-correlation, i.e.
    # flip_weight=True / torch.nn.functional.conv2d semantics).
    T = np.zeros((3, 3, 16, 16), np.float32)
    for i in range(3):
        for j in range(3):
            for h in range(4):
                for w in range(4):
                    hi, wi = h + i - 1, w + j - 1
                    if 0 <= hi < 4 and 0 <= wi < 4:
                        T[i, j, hi * 4 + wi, h * 4 + w] = 1.0
    return T


_TAPS_3X3 = _conv3x3_tap_tensor()


def _conv3x3_as_dense(weight):
    # weight (O, C, 3, 3) -> dense block-Toeplitz matrix M (C*16, O*16) such that
    # (x_flat @ M)[n, o*16+q] == conv3x3(x, weight, padding=1)[n, o, q//4, q%4].
    O, C = weight.shape[0], weight.shape[1]
    M = jnp.einsum("ocij,ijpq->cpoq", weight, jnp.asarray(_TAPS_3X3))
    return M.reshape(C * 16, O * 16)


def prepare_params(params, z_dim, in_channels, img_channels):
    """One-time parameter preprocessing (would be cached in a real pipeline):
    transpose/scale the fc & affine weights (folding all weight_gains), scatter the
    3x3 conv kernel into a dense (C*16, O*16) matrix, and build the style expander."""
    C, Z, O_img = in_channels, z_dim, img_channels
    assert Z == 2 * C, "SynthesisForeword forward requires in_channels == z_dim // 2"
    w_dim = 3 * C                      # mod vector = [ws_slot (C), x_global (Z)]
    conv_w = params["conv_w"]
    assert conv_w.shape == (C, C, 3, 3), "foreword conv is in_channels -> in_channels"

    fc_gain = 1.0 / float(np.sqrt(Z))          # FullyConnectedLayer(z_dim, ...)
    aff_gain = 1.0 / float(np.sqrt(w_dim))     # both affine layers
    rgb_gain = 1.0 / float(np.sqrt(C))         # ToRGBLayer.weight_gain (kernel_size=1)

    a1_w = params["conv_affine_w"] * aff_gain                 # (C, w_dim)
    a2_w = params["torgb_affine_w"] * (aff_gain * rgb_gain)   # (C, w_dim)

    f32 = jnp.float32
    return {
        "fc_wT": (params["fc_w"] * fc_gain).T.astype(f32),            # (Z, C*16)
        "fc_b": params["fc_b"].reshape(1, C * 16).astype(f32),
        "a1_wsT": a1_w[:, :C].T.astype(f32),                          # (C, C)
        "a1_xT": a1_w[:, C:].T.astype(f32),                           # (Z, C)
        "a1_b": params["conv_affine_b"].reshape(1, C).astype(f32),
        "a2_wsT": a2_w[:, :C].T.astype(f32),
        "a2_xT": a2_w[:, C:].T.astype(f32),
        "a2_b": (params["torgb_affine_b"] * rgb_gain).reshape(1, C).astype(f32),
        "convM": _conv3x3_as_dense(conv_w).astype(f32),               # (C*16, O*16)
        "w2sumT": jnp.sum(conv_w * conv_w, axis=(2, 3)).T.astype(f32),  # (C, O)
        "expand": jnp.asarray(np.kron(np.eye(C, dtype=np.float32),
                                      np.ones((1, 16), np.float32))),   # (C, C*16)
        "rgbM": jnp.kron(params["torgb_w"].reshape(O_img, C).T,
                         jnp.eye(16, dtype=f32)),                     # (C*16, O_img*16)
        "rgb_b": jnp.kron(params["torgb_b"].reshape(1, O_img),
                          jnp.ones((1, 16), f32)),                    # (1, O_img*16)
    }


# ----------------------------- forward -----------------------------

def synthesis_foreword_forward(prepped, x, ws, feats, img=None):
    del img  # architecture='skip' recomputes img
    N, Z = x.shape
    C = Z // 2
    c16 = prepped["convM"].shape[1]          # C*16
    o16 = prepped["rgbM"].shape[1]           # img_channels*16

    ws0 = ws[:, 0]
    ws1 = ws[:, 1]                           # == ws[:, 2*2-3] in the original module
    skip = feats[4].reshape(N, C * 16)       # free row-major reshape

    x_out_flat, img_flat = pl.pallas_call(
        foreword_kernel,
        out_shape=(jax.ShapeDtypeStruct((N, c16), jnp.float32),
                   jax.ShapeDtypeStruct((N, o16), jnp.float32)),
        compiler_params=pltpu.CompilerParams(vmem_limit_bytes=16 * 1024 * 1024),
    )(x, ws0, ws1, skip,
      prepped["fc_wT"], prepped["fc_b"],
      prepped["a1_wsT"], prepped["a1_xT"], prepped["a1_b"],
      prepped["a2_wsT"], prepped["a2_xT"], prepped["a2_b"],
      prepped["convM"], prepped["w2sumT"], prepped["expand"],
      prepped["rgbM"], prepped["rgb_b"])

    # free row-major reshapes back to NCHW
    return (x_out_flat.reshape(N, c16 // 16, 4, 4),
            img_flat.reshape(N, o16 // 16, 4, 4))


# ----------------------------- params / reference -----------------------------

def init_params(key, z_dim, in_channels, img_channels):
    w_dim = z_dim // 2 * 3
    keys = jax.random.split(key, 5)
    fc_out = z_dim // 2 * 4 * 4
    return {
        # FullyConnectedLayer(z_dim, z_dim//2*16, activation='lrelu')
        "fc_w": jax.random.normal(keys[0], (fc_out, z_dim), jnp.float32),
        "fc_b": jnp.zeros((fc_out,), jnp.float32),
        # SynthesisLayer.affine (bias_init=1) and 3x3 weight
        "conv_affine_w": jax.random.normal(keys[1], (in_channels, w_dim), jnp.float32),
        "conv_affine_b": jnp.ones((in_channels,), jnp.float32),
        "conv_w": jax.random.normal(keys[2], (in_channels, in_channels, 3, 3), jnp.float32),
        # ToRGBLayer.affine (bias_init=1), 1x1 weight, bias
        "torgb_affine_w": jax.random.normal(keys[3], (in_channels, w_dim), jnp.float32),
        "torgb_affine_b": jnp.ones((in_channels,), jnp.float32),
        "torgb_w": jax.random.normal(keys[4], (img_channels, in_channels, 1, 1), jnp.float32),
        "torgb_b": jnp.zeros((img_channels,), jnp.float32),
    }


def _ref_forward(params, x, ws, feats):
    # direct pure-JAX transcription of the PyTorch module (for correctness check)
    mm = functools.partial(jnp.matmul, precision=jax.lax.Precision.HIGHEST)
    es = functools.partial(jnp.einsum, precision=jax.lax.Precision.HIGHEST)
    N, Z = x.shape
    C = Z // 2
    w_dim = 3 * C

    y = mm(x, (params["fc_w"] * (1.0 / np.sqrt(Z))).T) + params["fc_b"]
    y = _lrelu(y, SQRT2)
    xm = y.reshape(N, C, 4, 4) + feats[4]

    mod1 = jnp.concatenate([ws[:, 0], x], axis=1)
    s1 = mm(mod1, (params["conv_affine_w"] * (1.0 / np.sqrt(w_dim))).T) + params["conv_affine_b"]
    w3 = params["conv_w"]
    wmod = w3[None] * s1[:, None, :, None, None]
    d = jax.lax.rsqrt(jnp.sum(wmod * wmod, axis=(2, 3, 4)) + 1e-8)
    wmod = wmod * d[:, :, None, None, None]
    xp = jnp.pad(xm, ((0, 0), (0, 0), (1, 1), (1, 1)))
    out = jnp.zeros((N, w3.shape[0], 4, 4), jnp.float32)
    for i in range(3):
        for j in range(3):
            out = out + es("noc,nchw->nohw", wmod[:, :, :, i, j], xp[:, :, i:i + 4, j:j + 4])
    x_out = _lrelu(out, SQRT2)

    mod2 = jnp.concatenate([ws[:, 1], x], axis=1)
    s2 = (mm(mod2, (params["torgb_affine_w"] * (1.0 / np.sqrt(w_dim))).T)
          + params["torgb_affine_b"]) * (1.0 / np.sqrt(C))
    tw = params["torgb_w"].reshape(params["torgb_w"].shape[0], C)
    img = es("oc,nc,nchw->nohw", tw, s2, x_out) + params["torgb_b"][None, :, None, None]
    return x_out, img


if __name__ == "__main__":
    z_dim = 16
    in_channels = z_dim // 2       # forward requires in_channels == z_dim // 2
    img_channels = 3
    N = 2

    key = jax.random.PRNGKey(0)
    k_param, k_x, k_ws, k_feat = jax.random.split(key, 4)
    params = init_params(k_param, z_dim, in_channels, img_channels)

    x = jax.random.normal(k_x, (N, z_dim), jnp.float32)
    ws = jax.random.normal(k_ws, (N, 2, z_dim // 2), jnp.float32)
    feats = {4: jax.random.normal(k_feat, (N, in_channels, 4, 4), jnp.float32)}
    img = jnp.zeros((N, img_channels, 4, 4), jnp.float32)

    prepped = prepare_params(params, z_dim, in_channels, img_channels)
    x_out, img_out = synthesis_foreword_forward(prepped, x, ws, feats, img)
    jax.block_until_ready((x_out, img_out))

    assert x_out.shape == (N, in_channels, 4, 4) and x_out.dtype == jnp.float32
    assert img_out.shape == (N, img_channels, 4, 4) and img_out.dtype == jnp.float32

    # correctness vs a straightforward pure-JAX reference of the PyTorch module
    x_ref, img_ref = _ref_forward(params, x, ws, feats)
    np.testing.assert_allclose(np.asarray(x_out), np.asarray(x_ref), rtol=1e-2, atol=1e-2)
    np.testing.assert_allclose(np.asarray(img_out), np.asarray(img_ref), rtol=1e-2, atol=1e-2)

    print("KERNEL_OK")
</pallas_src>

<mosaic_0001>
module attributes {stable_mosaic.version = 11 : i64} {
  func.func @foreword_kernel(%arg0: memref<2x16xf32, #tpu.memory_space<vmem>>, %arg1: memref<2x8xf32, #tpu.memory_space<vmem>>, %arg2: memref<2x8xf32, #tpu.memory_space<vmem>>, %arg3: memref<2x128xf32, #tpu.memory_space<vmem>>, %arg4: memref<16x128xf32, #tpu.memory_space<vmem>>, %arg5: memref<1x128xf32, #tpu.memory_space<vmem>>, %arg6: memref<8x8xf32, #tpu.memory_space<vmem>>, %arg7: memref<16x8xf32, #tpu.memory_space<vmem>>, %arg8: memref<1x8xf32, #tpu.memory_space<vmem>>, %arg9: memref<8x8xf32, #tpu.memory_space<vmem>>, %arg10: memref<16x8xf32, #tpu.memory_space<vmem>>, %arg11: memref<1x8xf32, #tpu.memory_space<vmem>>, %arg12: memref<128x128xf32, #tpu.memory_space<vmem>>, %arg13: memref<8x8xf32, #tpu.memory_space<vmem>>, %arg14: memref<8x128xf32, #tpu.memory_space<vmem>>, %arg15: memref<128x48xf32, #tpu.memory_space<vmem>>, %arg16: memref<1x48xf32, #tpu.memory_space<vmem>>, %arg17: memref<2x128xf32, #tpu.memory_space<vmem>>, %arg18: memref<2x48xf32, #tpu.memory_space<vmem>>) attributes {dimension_semantics = [], scalar_prefetch = 0 : i64, scratch_operands = 0 : i64, tpu.core_type = #tpu.core_type<tc>} {
    %c0 = arith.constant 0 : index
    %c0_0 = arith.constant 0 : index
    %0 = vector.load %arg0[%c0, %c0_0] : memref<2x16xf32, #tpu.memory_space<vmem>>, vector<2x16xf32>
    %c0_1 = arith.constant 0 : index
    %c0_2 = arith.constant 0 : index
    %1 = vector.load %arg4[%c0_1, %c0_2] : memref<16x128xf32, #tpu.memory_space<vmem>>, vector<16x128xf32>
    %cst = arith.constant dense<0.000000e+00> : vector<2x128xf32>
    %2 = tpu.matmul %0, %1, %cst {dimension_numbers = #tpu.dot_dimension_numbers<[1], [0], [0], [1], [0, 0, 1, 1], [], []>} : vector<2x16xf32>, vector<16x128xf32>, vector<2x128xf32> -> vector<2x128xf32>
    %c0_3 = arith.constant 0 : index
    %c0_4 = arith.constant 0 : index
    %3 = vector.load %arg5[%c0_3, %c0_4] : memref<1x128xf32, #tpu.memory_space<vmem>>, vector<1x128xf32>
    %4 = vector.broadcast %3 : vector<1x128xf32> to vector<2x128xf32>
    %5 = arith.addf %2, %4 : vector<2x128xf32>
    %cst_5 = arith.constant 0.000000e+00 : f32
    %6 = vector.broadcast %cst_5 : f32 to vector<2x128xf32>
    %7 = arith.cmpf oge, %5, %6 : vector<2x128xf32>
    %cst_6 = arith.constant 2.000000e-01 : f32
    %8 = vector.broadcast %cst_6 : f32 to vector<2x128xf32>
    %9 = arith.mulf %8, %5 : vector<2x128xf32>
    %10 = arith.select %7, %5, %9 : vector<2x128xi1>, vector<2x128xf32>
    %cst_7 = arith.constant 1.41421354 : f32
    %11 = vector.broadcast %cst_7 : f32 to vector<2x128xf32>
    %12 = arith.mulf %10, %11 : vector<2x128xf32>
    %c0_8 = arith.constant 0 : index
    %c0_9 = arith.constant 0 : index
    %13 = vector.load %arg3[%c0_8, %c0_9] : memref<2x128xf32, #tpu.memory_space<vmem>>, vector<2x128xf32>
    %14 = arith.addf %12, %13 : vector<2x128xf32>
    %c0_10 = arith.constant 0 : index
    %c0_11 = arith.constant 0 : index
    %15 = vector.load %arg1[%c0_10, %c0_11] : memref<2x8xf32, #tpu.memory_space<vmem>>, vector<2x8xf32>
    %c0_12 = arith.constant 0 : index
    %c0_13 = arith.constant 0 : index
    %16 = vector.load %arg6[%c0_12, %c0_13] : memref<8x8xf32, #tpu.memory_space<vmem>>, vector<8x8xf32>
    %cst_14 = arith.constant dense<0.000000e+00> : vector<2x8xf32>
    %17 = tpu.matmul %15, %16, %cst_14 {dimension_numbers = #tpu.dot_dimension_numbers<[1], [0], [0], [1], [0, 0, 1, 1], [], []>} : vector<2x8xf32>, vector<8x8xf32>, vector<2x8xf32> -> vector<2x8xf32>
    %c0_15 = arith.constant 0 : index
    %c0_16 = arith.constant 0 : index
    %18 = vector.load %arg7[%c0_15, %c0_16] : memref<16x8xf32, #tpu.memory_space<vmem>>, vector<16x8xf32>
    %cst_17 = arith.constant dense<0.000000e+00> : vector<2x8xf32>
    %19 = tpu.matmul %0, %18, %cst_17 {dimension_numbers = #tpu.dot_dimension_numbers<[1], [0], [0], [1], [0, 0, 1, 1], [], []>} : vector<2x16xf32>, vector<16x8xf32>, vector<2x8xf32> -> vector<2x8xf32>
    %20 = arith.addf %17, %19 : vector<2x8xf32>
    %c0_18 = arith.constant 0 : index
    %c0_19 = arith.constant 0 : index
    %21 = vector.load %arg8[%c0_18, %c0_19] : memref<1x8xf32, #tpu.memory_space<vmem>>, vector<1x8xf32>
    %22 = vector.broadcast %21 : vector<1x8xf32> to vector<2x8xf32>
    %23 = arith.addf %20, %22 : vector<2x8xf32>
    %c0_20 = arith.constant 0 : index
    %c0_21 = arith.constant 0 : index
    %24 = vector.load %arg2[%c0_20, %c0_21] : memref<2x8xf32, #tpu.memory_space<vmem>>, vector<2x8xf32>
    %c0_22 = arith.constant 0 : index
    %c0_23 = arith.constant 0 : index
    %25 = vector.load %arg9[%c0_22, %c0_23] : memref<8x8xf32, #tpu.memory_space<vmem>>, vector<8x8xf32>
    %cst_24 = arith.constant dense<0.000000e+00> : vector<2x8xf32>
    %26 = tpu.matmul %24, %25, %cst_24 {dimension_numbers = #tpu.dot_dimension_numbers<[1], [0], [0], [1], [0, 0, 1, 1], [], []>} : vector<2x8xf32>, vector<8x8xf32>, vector<2x8xf32> -> vector<2x8xf32>
    %c0_25 = arith.constant 0 : index
    %c0_26 = arith.constant 0 : index
    %27 = vector.load %arg10[%c0_25, %c0_26] : memref<16x8xf32, #tpu.memory_space<vmem>>, vector<16x8xf32>
    %cst_27 = arith.constant dense<0.000000e+00> : vector<2x8xf32>
    %28 = tpu.matmul %0, %27, %cst_27 {dimension_numbers = #tpu.dot_dimension_numbers<[1], [0], [0], [1], [0, 0, 1, 1], [], []>} : vector<2x16xf32>, vector<16x8xf32>, vector<2x8xf32> -> vector<2x8xf32>
    %29 = arith.addf %26, %28 : vector<2x8xf32>
    %c0_28 = arith.constant 0 : index
    %c0_29 = arith.constant 0 : index
    %30 = vector.load %arg11[%c0_28, %c0_29] : memref<1x8xf32, #tpu.memory_space<vmem>>, vector<1x8xf32>
    %31 = vector.broadcast %30 : vector<1x8xf32> to vector<2x8xf32>
    %32 = arith.addf %29, %31 : vector<2x8xf32>
    %c0_30 = arith.constant 0 : index
    %c0_31 = arith.constant 0 : index
    %33 = vector.load %arg14[%c0_30, %c0_31] : memref<8x128xf32, #tpu.memory_space<vmem>>, vector<8x128xf32>
    %cst_32 = arith.constant dense<0.000000e+00> : vector<2x128xf32>
    %34 = tpu.matmul %23, %33, %cst_32 {dimension_numbers = #tpu.dot_dimension_numbers<[1], [0], [0], [1], [0, 0, 1, 1], [], []>} : vector<2x8xf32>, vector<8x128xf32>, vector<2x128xf32> -> vector<2x128xf32>
    %35 = arith.mulf %14, %34 : vector<2x128xf32>
    %c0_33 = arith.constant 0 : index
    %c0_34 = arith.constant 0 : index
    %36 = vector.load %arg12[%c0_33, %c0_34] : memref<128x128xf32, #tpu.memory_space<vmem>>, vector<128x128xf32>
    %cst_35 = arith.constant dense<0.000000e+00> : vector<2x128xf32>
    %37 = tpu.matmul %35, %36, %cst_35 {dimension_numbers = #tpu.dot_dimension_numbers<[1], [0], [0], [1], [0, 0, 1, 1], [], []>} : vector<2x128xf32>, vector<128x128xf32>, vector<2x128xf32> -> vector<2x128xf32>
    %38 = arith.mulf %23, %23 : vector<2x8xf32>
    %c0_36 = arith.constant 0 : index
    %c0_37 = arith.constant 0 : index
    %39 = vector.load %arg13[%c0_36, %c0_37] : memref<8x8xf32, #tpu.memory_space<vmem>>, vector<8x8xf32>
    %cst_38 = arith.constant dense<0.000000e+00> : vector<2x8xf32>
    %40 = tpu.matmul %38, %39, %cst_38 {dimension_numbers = #tpu.dot_dimension_numbers<[1], [0], [0], [1], [0, 0, 1, 1], [], []>} : vector<2x8xf32>, vector<8x8xf32>, vector<2x8xf32> -> vector<2x8xf32>
    %cst_39 = arith.constant 9.99999993E-9 : f32
    %41 = vector.broadcast %cst_39 : f32 to vector<2x8xf32>
    %42 = arith.addf %40, %41 : vector<2x8xf32>
    %43 = math.rsqrt %42 : vector<2x8xf32>
    %cst_40 = arith.constant dense<0.000000e+00> : vector<2x128xf32>
    %44 = tpu.matmul %43, %33, %cst_40 {dimension_numbers = #tpu.dot_dimension_numbers<[1], [0], [0], [1], [0, 0, 1, 1], [], []>} : vector<2x8xf32>, vector<8x128xf32>, vector<2x128xf32> -> vector<2x128xf32>
    %45 = arith.mulf %37, %44 : vector<2x128xf32>
    %cst_41 = arith.constant 0.000000e+00 : f32
    %46 = vector.broadcast %cst_41 : f32 to vector<2x128xf32>
    %47 = arith.cmpf oge, %45, %46 : vector<2x128xf32>
    %cst_42 = arith.constant 2.000000e-01 : f32
    %48 = vector.broadcast %cst_42 : f32 to vector<2x128xf32>
    %49 = arith.mulf %48, %45 : vector<2x128xf32>
    %50 = arith.select %47, %45, %49 : vector<2x128xi1>, vector<2x128xf32>
    %cst_43 = arith.constant 1.41421354 : f32
    %51 = vector.broadcast %cst_43 : f32 to vector<2x128xf32>
    %52 = arith.mulf %50, %51 : vector<2x128xf32>
    %c0_44 = arith.constant 0 : index
    %c0_45 = arith.constant 0 : index
    %53 = vector.load %arg17[%c0_44, %c0_45] : memref<2x128xf32, #tpu.memory_space<vmem>>, vector<2x128xf32>
    tpu.vector_store %arg17[%c0_44, %c0_45], %52 {strides = array<i32>} : memref<2x128xf32, #tpu.memory_space<vmem>>, vector<2x128xf32>,
    %cst_46 = arith.constant dense<0.000000e+00> : vector<2x128xf32>
    %54 = tpu.matmul %32, %33, %cst_46 {dimension_numbers = #tpu.dot_dimension_numbers<[1], [0], [0], [1], [0, 0, 1, 1], [], []>} : vector<2x8xf32>, vector<8x128xf32>, vector<2x128xf32> -> vector<2x128xf32>
    %55 = arith.mulf %52, %54 : vector<2x128xf32>
    %c0_47 = arith.constant 0 : index
    %c0_48 = arith.constant 0 : index
    %56 = vector.load %arg15[%c0_47, %c0_48] : memref<128x48xf32, #tpu.memory_space<vmem>>, vector<128x48xf32>
    %cst_49 = arith.constant dense<0.000000e+00> : vector<2x48xf32>
    %57 = tpu.matmul %55, %56, %cst_49 {dimension_numbers = #tpu.dot_dimension_numbers<[1], [0], [0], [1], [0, 0, 1, 1], [], []>} : vector<2x128xf32>, vector<128x48xf32>, vector<2x48xf32> -> vector<2x48xf32>
    %c0_50 = arith.constant 0 : index
    %c0_51 = arith.constant 0 : index
    %58 = vector.load %arg16[%c0_50, %c0_51] : memref<1x48xf32, #tpu.memory_space<vmem>>, vector<1x48xf32>
    %59 = vector.broadcast %58 : vector<1x48xf32> to vector<2x48xf32>
    %60 = arith.addf %57, %59 : vector<2x48xf32>
    %c0_52 = arith.constant 0 : index
    %c0_53 = arith.constant 0 : index
    %61 = vector.load %arg18[%c0_52, %c0_53] : memref<2x48xf32, #tpu.memory_space<vmem>>, vector<2x48xf32>
    tpu.vector_store %arg18[%c0_52, %c0_53], %60 {strides = array<i32>} : memref<2x48xf32, #tpu.memory_space<vmem>>, vector<2x48xf32>,
    return
  }
}

</mosaic_0001>

<bundles_post_ra>
// kernel: tpu_custom_call.1
= control target key start
LH: loop header
LB: loop body
LE: loop exit
PB: predicated region body
PF: predicated region fallthrough
CT: control target
= control target key end

     0   :  { %s1548_s0 = inlined_call_operand.vmem [shape: f32[2,16], index: 0, kind: input, shape index: {}]   ;;  %s1549_s1 = inlined_call_operand.vmem [shape: f32[2,8], index: 1, kind: input, shape index: {}]   ;;  %s1550_s2 = inlined_call_operand.vmem [shape: f32[2,8], index: 2, kind: input, shape index: {}]   ;;  %s1551_s3 = inlined_call_operand.vmem [shape: f32[2,128], index: 3, kind: input, shape index: {}]   ;;  %s1552_s4 = inlined_call_operand.vmem [shape: f32[16,128], index: 4, kind: input, shape index: {}]   ;;  %s1553_s5 = inlined_call_operand.vmem [shape: f32[1,128], index: 5, kind: input, shape index: {}]   ;;  %s1554_s6 = inlined_call_operand.vmem [shape: f32[8,8], index: 6, kind: input, shape index: {}]   ;;  %s1555_s7 = inlined_call_operand.vmem [shape: f32[16,8], index: 7, kind: input, shape index: {}]   ;;  %s1556_s8 = inlined_call_operand.vmem [shape: f32[1,8], index: 8, kind: input, shape index: {}]   ;;  %s1557_s9 = inlined_call_operand.vmem [shape: f32[8,8], index: 9, kind: input, shape index: {}]   ;;  %s1558_s10 = inlined_call_operand.vmem [shape: f32[16,8], index: 10, kind: input, shape index: {}]   ;;  %s1559_s11 = inlined_call_operand.vmem [shape: f32[1,8], index: 11, kind: input, shape index: {}]   ;;  %s1560_s12 = inlined_call_operand.vmem [shape: f32[128,128], index: 12, kind: input, shape index: {}]   ;;  %s1561_s13 = inlined_call_operand.vmem [shape: f32[8,8], index: 13, kind: input, shape index: {}]   ;;  %s1562_s14 = inlined_call_operand.vmem [shape: f32[8,128], index: 14, kind: input, shape index: {}]   ;;  %s1563_s15 = inlined_call_operand.vmem [shape: f32[128,48], index: 15, kind: input, shape index: {}]   ;;  %s1564_s16 = inlined_call_operand.vmem [shape: f32[1,48], index: 16, kind: input, shape index: {}]   ;;  %s1565_s17 = inlined_call_operand.hbm [shape: f32[2,128], index: 17, kind: output, shape index: {0}]   ;;  %s1566_s18 = inlined_call_operand.hbm [shape: f32[2,48], index: 18, kind: output, shape index: {1}]  }
   0x1   :  { %1567 = sst [smem:[#allocation8_spill]] %s1548_s0 }
   0x2   :  { %1568 = sst [smem:[#allocation9_spill]] %s1549_s1 }
   0x3   :  { %1569 = sst [smem:[#allocation10_spill]] %s1550_s2 }
   0x4   :  { %24 = vsyncpa [#allocation3], 0  ;;  %v62_v0 = vld [vmem:[%s1552_s4 + $0x8] sm:$0xff]  ;;  %v1213_v1 = vmov 0.0   ;;  %v61_v2 = vld [vmem:[%s1552_s4] sm:$0xff]  ;;  %vm1214_vm0 = vmmov 0  }
   0x5   :  { %1042 = vmatprep.subr.mxu0 %v1213_v1  ;;  %1046 = vmatprep.mubr.msk.f32.mxu0 %vm1214_vm0, %v1213_v1  ;;  %s1570_s1 = sld [smem:[#allocation8_spill]]  ;;  %vm70_vm1 = vcmask 130048  }
   0x6   :  { %1043 = vmatpush3.msra.mxu0 %v62_v0  ;;  %1061 = vmatprep.subr.mxu1 %v1213_v1 }
   0xb   :  { %v60_v3 = vld [vmem:[%s1570_s1] sm:$0x3] }
   0xc   :  { %25 = vsyncpa [#allocation5], 0  ;;  %1044 = vmatprep.subr.mxu0 %v1213_v1  ;;  %v153_v4 = vld [vmem:[%s1555_s7 + $0x8] sm:$0xff]  ;;  %1065 = vmatprep.mubr.msk.f32.mxu1 %vm1214_vm0, %v1213_v1  ;;  %v152_v5 = vld [vmem:[%s1555_s7] sm:$0xff]  ;;  %s1571_s25 = sld [smem:[#allocation9_spill]]  ;;  %vm224_vm2 = vcmask 64512  }
   0xd   :  { %1045 = vmatpush3.msra.mxu0 %v61_v2  ;;  %v151_v6 = vld [vmem:[%s1554_s6] sm:$0xff]  ;;  %v309_v8 = vld [vmem:[%s1558_s10 + $0x8] sm:$0xff]  ;;  %s1572_s1 = sld [smem:[#allocation10_spill]]  ;;  %v551_v13 = vld [vmem:[%s1560_s12 + $0x78] sm:$0xff]  ;;  %s1215_s20 = smov [#allocation2]  }
   0xe   :  { %1047 = vmatmul.mubr.msk.f32.vlgmr.msra.gmra.mxu0 %vm70_vm1, %v60_v3  ;;  %1049 = vmatprep.subr.mxu0 %v1213_v1  ;;  %v308_v9 = vld [vmem:[%s1558_s10] sm:$0xff]  ;;  %v550_v14 = vld [vmem:[%s1560_s12 + $0x70] sm:$0xff]  ;;  %v549_v15 = vld [vmem:[%s1560_s12 + $0x68] sm:$0xff] }
   0xf   :  { %1050 = vmatpush3.msra.mxu0 %v153_v4  ;;  %1053 = vmatprep.mubr.msk.f32.mxu0 %vm1214_vm0, %v1213_v1  ;;  %v307_v10 = vld [vmem:[%s1557_s9] sm:$0xff]  ;;  %v547_v17 = vld [vmem:[%s1560_s12 + $0x58] sm:$0xff]  ;;  %v546_v18 = vld [vmem:[%s1560_s12 + $0x50] sm:$0xff]  ;;  %s952_s9 = sshll.u32 %s1215_s20, 4  ;;  %s953_s9 = int_to_ptr.vmem [resolvable:$true] %s952_s9 }
  0x10   :  { %1051 = vmatprep.subr.mxu0 %v1213_v1  ;;  %1062 = vmatpush3.msra.mxu1 %v309_v8  ;;  %v1377_v12 = vld [vmem:[%s1562_s14] sm:$0xff]  ;;  %v545_v19 = vld [vmem:[%s1560_s12 + $0x48] sm:$0xff]  ;;  %v543_v21 = vld [vmem:[%s1560_s12 + $0x38] sm:$0xff]  ;;  %s1169_s21 = scalar_lea.vmem %s953_s9, 32  ;;  %p1174_p1 = scmp.lt.s32.totalorder %s953_s9, %s953_s9 }
  0x11   :  { %1052 = vmatpush3.msra.mxu0 %v152_v5  ;;  %1063 = vmatprep.subr.mxu1 %v1213_v1  ;;  %v548_v16 = vld [vmem:[%s1560_s12 + $0x60] sm:$0xff]  ;;  %v542_v22 = vld [vmem:[%s1560_s12 + $0x30] sm:$0xff]  ;;  %v541_v23 = vld [vmem:[%s1560_s12 + $0x28] sm:$0xff]  ;;  %p1170_p0 = scmp.ne.s32.totalorder %s953_s9, %s1169_s21  ;;  %p1175_p2 = scmp.lt.s32.totalorder %s1169_s21, %s1169_s21 }
  0x12   :  { %1054 = vmatmul.mubr.msk.f32.vlgmr.msra.gmra.mxu0 %vm70_vm1, %v60_v3  ;;  %1056 = vmatprep.subr.mxu0 %v1213_v1  ;;  %v150_v7 = vld [vmem:[%s1571_s25] sm:$0x3]  ;;  %v539_v25 = vld [vmem:[%s1560_s12 + $0x18] sm:$0xff]  ;;  %v538_v26 = vld [vmem:[%s1560_s12 + $0x10] sm:$0xff] }
  0x13   :  { %1057 = vmatpush3.msra.mxu0 %v151_v6  ;;  %1058 = vmatprep.mubr.msk.f32.mxu0 %vm1214_vm0, %v1213_v1  ;;  %v306_v11 = vld [vmem:[%s1572_s1] sm:$0x3]  ;;  %v537_v43 = vld [vmem:[%s1560_s12 + $0x8] sm:$0xff]  ;;  %v866_v61 = vld [vmem:[%s1563_s15 + $0x78] sm:$0xff]  ;;  %p1176_p3 = por %p1175_p2, %p1174_p1 }
  0x14   :  { %1068 = vmatprep.subr.mxu0 %v1213_v1  ;;  %1064 = vmatpush3.msra.mxu1 %v308_v9  ;;  %v544_v20 = vld [vmem:[%s1560_s12 + $0x40] sm:$0xff]  ;;  %v865_v62 = vld [vmem:[%s1563_s15 + $0x70] sm:$0xff]  ;;  %v864_v63 = vld [vmem:[%s1563_s15 + $0x68] sm:$0xff] }
  0x15   :  { %1066 = vmatmul.mubr.msk.f32.vlgmr.msra.gmra.mxu1 %vm70_vm1, %v60_v3  ;;  %1073 = vmatprep.subr.mxu1 %v1213_v1  ;;  %v540_v24 = vld [vmem:[%s1560_s12 + $0x20] sm:$0xff]  ;;  %v862_v2 = vld [vmem:[%s1563_s15 + $0x58] sm:$0xff]  ;;  %v861_v3 = vld [vmem:[%s1563_s15 + $0x50] sm:$0xff]  ;;  %p1177_p4 = pnand %p1176_p3, %p1170_p0 }
  0x16   :  { %1059 = vmatmul.mubr.msk.f32.vlgmr.msra.gmra.mxu0 %vm224_vm2, %v150_v7  ;;  %1075 = vmatprep.mubr.msk.f32.mxu1 %vm1214_vm0, %v1213_v1  ;;  %v978_v32 = vld [vmem:[%s1556_s8] ss:$0 sm:$0xff]  ;;  %v860_v4 = vld [vmem:[%s1563_s15 + $0x48] sm:$0xff]  ;;  %v858_v6 = vld [vmem:[%s1563_s15 + $0x38] sm:$0xff] }
  0x17   :  { %1070 = vmatprep.mubr.msk.f32.mxu0 %vm1214_vm0, %v1213_v1  ;;  %1069 = vmatpush3.msra.mxu0 %v307_v10  ;;  %v623_v36 = vld [vmem:[%s1561_s13] sm:$0xff]  ;;  %v857_v7 = vld [vmem:[%s1563_s15 + $0x30] sm:$0xff]  ;;  %v856_v8 = vld [vmem:[%s1563_s15 + $0x28] sm:$0xff] }
  0x18   :  { %1078 = vmatprep.subr.mxu0 %v1213_v1  ;;  %1074 = vmatpush3.msra.mxu1 %v1377_v12  ;;  %v536_v44 = vld [vmem:[%s1560_s12] sm:$0xff]  ;;  %v854_v10 = vld [vmem:[%s1563_s15 + $0x18] sm:$0xff] }
  0x19   :  { %1113 = vmatprep.subr.mxu1 %v1213_v1  ;;  %v974_v45 = vld [vmem:[%s1553_s5] ss:$0 sm:$0xff] }
  0x1a   :  { %1071 = vmatmul.mubr.msk.f32.vlgmr.msra.gmra.mxu0 %vm224_vm2, %v306_v11  ;;  %v148_v50 = vld [vmem:[%s1551_s3] sm:$0x3]  ;;  %v853_v11 = vld [vmem:[%s1563_s15 + $0x10] sm:$0xff] }
  0x1b   :  { %1110 = vmatprep.mubr.msk.f32.mxu0 %vm1214_vm0, %v1213_v1  ;;  %1079 = vmatpush3.msra.mxu0 %v551_v13  ;;  %v981_v59 = vld [vmem:[%s1559_s11] ss:$0 sm:$0xff] }
  0x1c   :  { %1080 = vmatprep.subr.mxu0 %v1213_v1  ;;  %v863_v0 = vld [vmem:[%s1563_s15 + $0x60] sm:$0xff] }
  0x1d   :  { %1081 = vmatpush3.msra.mxu0 %v550_v14  ;;  %v859_v5 = vld [vmem:[%s1563_s15 + $0x40] sm:$0xff] }
  0x1e   :  { %1082 = vmatprep.subr.mxu0 %v1213_v1  ;;  %v855_v9 = vld [vmem:[%s1563_s15 + $0x20] sm:$0xff] }
  0x1f   :  { %1083 = vmatpush3.msra.mxu0 %v549_v15  ;;  %v851_v13 = vld [vmem:[%s1563_s15] sm:$0xff] }
  0x20   :  { %1084 = vmatprep.subr.mxu0 %v1213_v1 }
  0x21   :  { %1085 = vmatpush3.msra.mxu0 %v548_v16 }
  0x22   :  { %1086 = vmatprep.subr.mxu0 %v1213_v1 }
  0x23   :  { %1087 = vmatpush3.msra.mxu0 %v547_v17 }
  0x24   :  { %1088 = vmatprep.subr.mxu0 %v1213_v1 }
  0x25   :  { %1089 = vmatpush3.msra.mxu0 %v546_v18 }
  0x26   :  { %1090 = vmatprep.subr.mxu0 %v1213_v1 }
  0x27   :  { %1091 = vmatpush3.msra.mxu0 %v545_v19 }
  0x28   :  { %1092 = vmatprep.subr.mxu0 %v1213_v1 }
  0x29   :  { %1093 = vmatpush3.msra.mxu0 %v544_v20 }
  0x2a   :  { %1094 = vmatprep.subr.mxu0 %v1213_v1 }
  0x2b   :  { %1095 = vmatpush3.msra.mxu0 %v543_v21 }
  0x2c   :  { %1096 = vmatprep.subr.mxu0 %v1213_v1 }
  0x2d   :  { %1097 = vmatpush3.msra.mxu0 %v542_v22 }
  0x2e   :  { %1098 = vmatprep.subr.mxu0 %v1213_v1 }
  0x2f   :  { %1099 = vmatpush3.msra.mxu0 %v541_v23 }
  0x30   :  { %1100 = vmatprep.subr.mxu0 %v1213_v1 }
  0x31   :  { %1101 = vmatpush3.msra.mxu0 %v540_v24 }
  0x32   :  { %1102 = vmatprep.subr.mxu0 %v1213_v1 }
  0x33   :  { %1103 = vmatpush3.msra.mxu0 %v539_v25 }
  0x34   :  { %1104 = vmatprep.subr.mxu0 %v1213_v1 }
  0x35   :  { %1105 = vmatpush3.msra.mxu0 %v538_v26 }
  0x36   :  { %1106 = vmatprep.subr.mxu0 %v1213_v1 }
  0x37   :  { %1107 = vmatpush3.msra.mxu0 %v537_v43 }
  0x38   :  { %1108 = vmatprep.subr.mxu0 %v1213_v1 }
  0x39   :  { %1109 = vmatpush3.msra.mxu0 %v536_v44 }
  0xce   :  { %v140_v27 = vpop.f32.mrf.mxu0 }
  0xcf   :  { %v141_v46 = vadd.f32 %v974_v45, %v140_v27 }
  0xd0   :  { %v1048_v28 = vpop.f32.mrf.mxu0 }
  0xd1   :  { %v145_v47 = vmul.f32 0.2, %v141_v46  ;;  %vm144_vm3 = vcmp.ge.f32.partialorder %v141_v46, 0.0 }
  0xd2   :  { %v220_v29 = vpop.f32.mrf.mxu0 }
  0xd3   :  { %v146_v48 = vsel %vm144_vm3, %v141_v46, %v145_v47 }
  0xd4   :  { %v1055_v30 = vpop.f32.mrf.mxu0  ;;  %v147_v49 = vmul.f32 1.4142135, %v146_v48 }
  0xd5   :  { %v376_v38 = vpop.f32.mrf.mxu1 }
  0xd6   :  { %v294_v31 = vpop.f32.mrf.mxu0  ;;  %v149_v51 = vadd.f32 %v148_v50, %v147_v49 }
  0xd7   :  { %v295_v33 = vadd.f32 %v294_v31, %v220_v29  ;;  %v1067_v39 = vpop.f32.mrf.mxu1 }
  0xd8   :  { %v1060_v34 = vpop.f32.mrf.mxu0 }
  0xd9   :  { %v305_v35 = vadd.f32 %v978_v32, %v295_v33 }
  0xda   :  { %v449_v40 = vpop.f32.mrf.mxu0 }
  0xdb   :  { %1076 = vmatmul.mubr.msk.f32.vlgmr.msra.gmra.mxu1 %vm224_vm2, %v305_v35  ;;  %v622_v37 = vmul.f32 %v305_v35, %v305_v35  ;;  %v450_v41 = vadd.f32 %v449_v40, %v376_v38 }
  0xdc   :  { %1114 = vmatpush3.msra.mxu1 %v623_v36  ;;  %1115 = vmatprep.mubr.msk.f32.mxu1 %vm1214_vm0, %v1213_v1  ;;  %v1072_v42 = vpop.f32.mrf.mxu0 }
  0xdd   :  { %1118 = vmatprep.subr.mxu1 %v1213_v1  ;;  %v460_v60 = vadd.f32 %v981_v59, %v450_v41 }
  0xdf   :  { %1116 = vmatmul.mubr.msk.f32.vlgmr.msra.gmra.mxu1 %vm224_vm2, %v622_v37 }
  0xe0   :  { %1119 = vmatpush3.msra.mxu1 %v1377_v12  ;;  %1120 = vmatprep.mubr.msk.f32.mxu1 %vm1214_vm0, %v1213_v1 }
  0xe1   :  { %1123 = vmatprep.subr.mxu1 %v1213_v1 }
 0x19b   :  { %v531_v52 = vpop.f32.mrf.mxu1 }
 0x19c   :  { %v535_v53 = vmul.f32 %v531_v52, %v149_v51 }
 0x19d   :  { %v1077_v54 = vpop.f32.mrf.mxu1 }
 0x19e   :  { %1111 = vmatmul.mubr.f32.vlgmr.msra.gmra.mxu0 %v535_v53 }
 0x19f   :  { %v693_v55 = vpop.f32.mrf.mxu1 }
 0x1a0   :  { %v694_v56 = vadd.f32 1e-08, %v693_v55 }
 0x1a1   :  { %v1117_v57 = vpop.f32.mrf.mxu1 }
 0x1a2   :  { %1167 = vrsqrt.f32 %v694_v56 }
 0x1af   :  { %v1168_v58 = vpop.eup %1167 }
 0x1b0   :  { %1121 = vmatmul.mubr.msk.f32.vlgmr.msra.gmra.mxu1 %vm224_vm2, %v1168_v58 }
 0x1b1   :  { %1124 = vmatpush3.msra.mxu1 %v1377_v12  ;;  %1125 = vmatprep.mubr.msk.f32.mxu1 %vm1214_vm0, %v1213_v1  ;;  %v852_v12 = vld [vmem:[%s1563_s15 + $0x8] sm:$0xff] }
 0x1b2   :  { %1128 = vmatprep.subr.mxu1 %v1213_v1 }
 0x1b4   :  { %1126 = vmatmul.mubr.msk.f32.vlgmr.msra.gmra.mxu1 %vm224_vm2, %v460_v60 }
 0x1b5   :  { %1129 = vmatpush3.msra.mxu1 %v866_v61  ;;  %1160 = vmatprep.mubr.msk.f32.mxu1 %vm1214_vm0, %v1213_v1 }
 0x1b6   :  { %1130 = vmatprep.subr.mxu1 %v1213_v1 }
 0x1b7   :  { %1131 = vmatpush3.msra.mxu1 %v865_v62 }
 0x1b8   :  { %1132 = vmatprep.subr.mxu1 %v1213_v1 }
 0x1b9   :  { %1133 = vmatpush3.msra.mxu1 %v864_v63 }
 0x1ba   :  { %1134 = vmatprep.subr.mxu1 %v1213_v1 }
 0x1bb   :  { %1135 = vmatpush3.msra.mxu1 %v863_v0 }
 0x1bc   :  { %1136 = vmatprep.subr.mxu1 %v1213_v1 }
 0x1bd   :  { %1137 = vmatpush3.msra.mxu1 %v862_v2 }
 0x1be   :  { %1138 = vmatprep.subr.mxu1 %v1213_v1 }
 0x1bf   :  { %1139 = vmatpush3.msra.mxu1 %v861_v3 }
 0x1c0   :  { %1140 = vmatprep.subr.mxu1 %v1213_v1 }
 0x1c1   :  { %1141 = vmatpush3.msra.mxu1 %v860_v4 }
 0x1c2   :  { %1142 = vmatprep.subr.mxu1 %v1213_v1 }
 0x1c3   :  { %1143 = vmatpush3.msra.mxu1 %v859_v5 }
 0x1c4   :  { %1144 = vmatprep.subr.mxu1 %v1213_v1 }
 0x1c5   :  { %1145 = vmatpush3.msra.mxu1 %v858_v6 }
 0x1c6   :  { %1146 = vmatprep.subr.mxu1 %v1213_v1 }
 0x1c7   :  { %1147 = vmatpush3.msra.mxu1 %v857_v7 }
 0x1c8   :  { %1148 = vmatprep.subr.mxu1 %v1213_v1 }
 0x1c9   :  { %1149 = vmatpush3.msra.mxu1 %v856_v8 }
 0x1ca   :  { %1150 = vmatprep.subr.mxu1 %v1213_v1 }
 0x1cb   :  { %1151 = vmatpush3.msra.mxu1 %v855_v9 }
 0x1cc   :  { %1152 = vmatprep.subr.mxu1 %v1213_v1 }
 0x1cd   :  { %1153 = vmatpush3.msra.mxu1 %v854_v10 }
 0x1ce   :  { %1154 = vmatprep.subr.mxu1 %v1213_v1 }
 0x1cf   :  { %1155 = vmatpush3.msra.mxu1 %v853_v11 }
 0x1d0   :  { %1156 = vmatprep.subr.mxu1 %v1213_v1 }
 0x1d1   :  { %1157 = vmatpush3.msra.mxu1 %v852_v12 }
 0x1d2   :  { %1158 = vmatprep.subr.mxu1 %v1213_v1 }
 0x1d3   :  { %1159 = vmatpush3.msra.mxu1 %v851_v13 }
 0x25e   :  { %v618_v14 = vpop.f32.mrf.mxu0 }
 0x260   :  { %v1112_v15 = vpop.f32.mrf.mxu0 }
 0x270   :  { %v767_v16 = vpop.f32.mrf.mxu1 }
 0x271   :  { %v771_v17 = vmul.f32 %v767_v16, %v618_v14 }
 0x272   :  { %v1122_v18 = vpop.f32.mrf.mxu1 }
 0x273   :  { %v773_v19 = vmul.f32 0.2, %v771_v17  ;;  %vm772_vm4 = vcmp.ge.f32.partialorder %v771_v17, 0.0 }
 0x274   :  { %v846_v20 = vpop.f32.mrf.mxu1 }
 0x275   :  { %v774_v21 = vsel %vm772_vm4, %v771_v17, %v773_v19 }
 0x276   :  { %v775_v22 = vmul.f32 1.4142135, %v774_v21  ;;  %v1127_v23 = vpop.f32.mrf.mxu1 }
 0x278   :  { %v850_v24 = vmul.f32 %v846_v20, %v775_v22  ;;  %776 = vst [vmem:[#allocation2] sm:$0x3] %v775_v22 }
 0x27a   :  { %1161 = vmatmul.mubr.f32.vlgmr.msra.gmra.mxu1 %v850_v24 }
 0x27b   :  { %1180 = shalt.err (!%p1177_p4)
}
 0x27c   :  { %955 = dma.vmem_to_hbm [thread:$0]  %s953_s9, 32, %s1565_s17, [#allocation3]   ;;  %v986_v1 = vld [vmem:[%s1564_s16] ss:$0 sm:$0xff]  ;;  %vm944_vm5 = vcmask 386048  }
 0x27d   :  { %s1216_s23 = smov [#allocation4]  }
 0x27e   :  { %s962_s14 = sshll.u32 %s1216_s23, 4  ;;  %s963_s14 = int_to_ptr.vmem [resolvable:$true] %s962_s14 }
 0x27f   :  { %s1189_s7 = scalar_lea.vmem %s963_s14, 32  ;;  %p1194_p6 = scmp.lt.s32.totalorder %s963_s14, %s963_s14 }
 0x280   :  { %p1190_p5 = scmp.ne.s32.totalorder %s963_s14, %s1189_s7  ;;  %p1195_p7 = scmp.lt.s32.totalorder %s1189_s7, %s1189_s7 }
 0x282   :  { %p1196_p8 = por %p1195_p7, %p1194_p6 }
 0x284   :  { %p1197_p9 = pnand %p1196_p8, %p1190_p5 }
 0x33a   :  { %v940_v25 = vpop.f32.mrf.mxu1 }
 0x33b   :  { %v941_v26 = vadd.f32 %v986_v1, %v940_v25 }
 0x33c   :  { %v1162_v27 = vpop.f32.mrf.mxu1 }
 0x33d   :  { %945 = vst.msk [vmem:[#allocation4] sm:$0x3] %vm944_vm5, %v941_v26 }
 0x33e   :  { %1200 = shalt.err (!%p1197_p9)
}
 0x33f   :  { %965 = dma.vmem_to_hbm [thread:$0]  %s963_s14, 32, %s1566_s18, [#allocation5]  }
 0x340   :  { %1209 = dma.done.wait [#allocation3], 32  }
 0x341   :  { %1210 = vsyncadd [#allocation3], 4294967264 }
 0x342   :  { %1211 = dma.done.wait [#allocation5], 32  }
 0x343   :  { %1212 = vsyncadd [#allocation5], 4294967264 }
 0x344   :  { %972 = vsyncpa [#allocation3], 1 }
 0x345   :  { %973 = vsyncpa [#allocation5], 1 }

</bundles_post_ra>
